<compile_context>
chip_gen: v6e
topology: v6e:2x2x1
jax: 0.10.0
libtpu: 0.0.40
codegen_flags: <defaults>
</compile_context>

<pallas_src>
import functools

import numpy as np
import jax
import jax.numpy as jnp
from jax import lax
from jax.experimental import pallas as pl
from jax.experimental.pallas import tpu as pltpu

BN_EPS = 1e-5  # nn.BatchNorm2d default


def _round_up(x, m):
    return (x + m - 1) // m * m


def _cdiv(a, b):
    return -(-a // b)


def _vmem_capacity_bytes():
    try:
        return int(pltpu.get_tpu_info().vmem_capacity_bytes)
    except Exception:
        return 64 << 20  # conservative default (v7x physical VMEM)


def _vmem_limit_bytes(C, OC, tm, halo_p, cap):
    need = (2 * (C * tm * 2)           # current input tile, double-buffered, bf16
            + 2 * (C * halo_p * 2)     # halo block, double-buffered
            + 2 * (tm * 4)             # mask tile (pass 1), double-buffered
            + 2 * (OC * tm * 4)        # output tile (pass 2), double-buffered
            + C * (tm + halo_p) * 2    # stitch scratch
            + (2 << 20))               # weights / scale / shift / stats + headroom
    hi = (64 << 20) if cap >= (96 << 20) else (32 << 20)  # keep v7x (64 MiB VMEM) safe
    return int(min(max(need, 16 << 20), hi))


def _conv_tile(w_ref, xbuf, tap_offsets, tm):
    """y[OC, TM] = sum_over_taps  W_tap[OC, C] @ x_shifted_tap[C, TM]  (bf16 MXU, f32 accum)."""
    acc = None
    for t, off in enumerate(tap_offsets):   # static unroll (KH*KW taps)
        part = jnp.dot(w_ref[t], xbuf[:, off:off + tm],
                       preferred_element_type=jnp.float32)
        acc = part if acc is None else acc + part
    return acc


def _stats_kernel(w_ref, mask_ref, cur_ref, halo_ref, stats_ref, xbuf, *, tap_offsets, tm):
    # Stitch current tile + halo into one contiguous VMEM buffer (tap slices never cross it).
    xbuf[:, :tm] = cur_ref[0]
    xbuf[:, tm:] = halo_ref[0]
    y = _conv_tile(w_ref, xbuf, tap_offsets, tm)            # [OC, TM] f32
    m = mask_ref[...]                                       # [1, TM] f32: 1.0 at real outputs
    ym = y * m
    s0 = jnp.sum(ym, axis=1, keepdims=True)                 # [OC, 1] sum
    s1 = jnp.sum(ym * y, axis=1, keepdims=True)             # [OC, 1] sum of squares
    stats_ref[0, 0] = jnp.concatenate([s0, s1], axis=1)     # single [OC, 2] store per step


def _apply_kernel(w_ref, scale_ref, shift_ref, cur_ref, halo_ref, out_ref, xbuf,
                  *, tap_offsets, tm):
    xbuf[:, :tm] = cur_ref[0]
    xbuf[:, tm:] = halo_ref[0]
    y = _conv_tile(w_ref, xbuf, tap_offsets, tm)            # [OC, TM] f32
    # Fused BatchNorm (precomputed per-channel scale/shift) + ReLU; lane-dense unmasked store.
    out_ref[0] = jnp.maximum(y * scale_ref[...] + shift_ref[...], 0.0).astype(out_ref.dtype)


def conv2d_norm_forward(x, weight, bias, gamma, beta, *, stride):
    """x: [N, C, H, W] (NCHW, like PyTorch).  weight: [OC, C, KH, KW].
    Conv2d(pad=(K-1)//2) -> BatchNorm2d (train-mode batch stats) -> ReLU.
    `bias` is accepted for API parity but not applied: train-mode BN subtracts the batch mean
    right after the conv, so the bias cancels exactly."""
    del bias  # mathematically cancelled by train-mode BN
    N, C, H, W = x.shape
    OC, _, KH, KW = weight.shape
    pad = (KH - 1) // 2  # TODO(synk): assumes odd square kernel, matching the PyTorch module
    Hp, Wp = H + 2 * pad, W + 2 * pad
    OH = (H + 2 * pad - KH) // stride + 1
    OW = (W + 2 * pad - KW) // stride + 1
    M = N * OH * OW            # true BN element count per channel
    Lp = Hp * Wp               # per-image dense flat domain the kernel computes over

    # --- tile sizing (per-generation, VMEM-aware) ---
    cap = _vmem_capacity_bytes()
    halo = (KH - 1) * Wp + (KW - 1)                 # max tap offset in the flat domain
    halo_p = _round_up(max(halo, 1), 128)
    base_tm = 1024 if cap >= (96 << 20) else 512    # bigger tiles on v5e/v6e, capped for v7x
    per_m_bytes = 6 * C + 8 * OC + 8                # resident bytes per flat position (approx)
    base_tm = min(base_tm, max(128, ((cap // 4) // per_m_bytes) // 128 * 128))
    if Lp <= 2 * base_tm:
        tm = _round_up(_cdiv(Lp, 4), 128)           # small problems: keep >=3-4 grid steps
    else:
        tm = base_tm
    tm = _round_up(max(tm, halo_p), halo_p)         # halo BlockSpec requires tm % halo_p == 0
    T = _cdiv(Lp, tm)
    Lpad = (T + 1) * tm                             # +1 tile so the last tile's halo block exists

    # --- XLA glue (one cheap fused pass over x): 'same' pad, flatten spatial, pad tail, bf16 ---
    # TODO(synk): the spatial pad itself could also move in-kernel with per-tap boundary masks;
    # it is a single ~(Hp*Wp)/(H*W) pass and is kept in XLA for simplicity.
    xp = jnp.pad(x, ((0, 0), (0, 0), (pad, pad), (pad, pad)))
    xf = jnp.pad(xp.reshape(N, C, Lp), ((0, 0), (0, 0), (0, Lpad - Lp))).astype(jnp.bfloat16)

    # per-tap weights [KH*KW, OC, C]; tap t = ki*KW + kj  <->  flat offset ki*Wp + kj
    w_taps = jnp.transpose(weight, (2, 3, 0, 1)).reshape(KH * KW, OC, C).astype(jnp.bfloat16)
    tap_offsets = tuple(ki * Wp + kj for ki in range(KH) for kj in range(KW))

    # validity mask over the dense flat domain (1.0 exactly at the strided output positions)
    j = np.arange(T * tm)
    row, col = j // Wp, j % Wp
    valid = ((j < Lp) & (row % stride == 0) & (col % stride == 0)
             & (row < stride * OH) & (col < stride * OW))
    mask = jnp.asarray(valid.astype(np.float32)).reshape(1, T * tm)

    cparams = pltpu.CompilerParams(
        dimension_semantics=("parallel", "parallel"),   # independent tiles -> megacore-shardable
        vmem_limit_bytes=_vmem_limit_bytes(C, OC, tm, halo_p, cap),
    )

    w_spec = pl.BlockSpec((KH * KW, OC, C), lambda n, t: (0, 0, 0))
    cur_spec = pl.BlockSpec((1, C, tm), lambda n, t: (n, 0, t))
    halo_spec = pl.BlockSpec((1, C, halo_p), lambda n, t: (n, 0, (t + 1) * (tm // halo_p)))
    mask_spec = pl.BlockSpec((1, tm), lambda n, t: (0, t))
    scratch = [pltpu.VMEM((C, tm + halo_p), jnp.bfloat16)]

    # --- pass 1: in-kernel im2col conv + per-tile BN partials (sum, sumsq) per channel ---
    stats = pl.pallas_call(
        functools.partial(_stats_kernel, tap_offsets=tap_offsets, tm=tm),
        out_shape=jax.ShapeDtypeStruct((N, T, OC, 2), jnp.float32),
        grid=(N, T),
        in_specs=[w_spec, mask_spec, cur_spec, halo_spec],
        out_specs=pl.BlockSpec((1, 1, OC, 2), lambda n, t: (n, t, 0, 0)),
        scratch_shapes=scratch,
        compiler_params=cparams,
    )(w_taps, mask, xf, xf)

    # tiny O(OC) finalize: mean, biased var, fused BN scale/shift
    psum = jnp.sum(stats, axis=(0, 1))                      # [OC, 2]
    mean = psum[:, 0] / M
    # TODO(synk): E[y^2] - mean^2 can cancel for large per-channel means; switch to shifted /
    # centered sums if tolerances ever tighten.
    var = jnp.maximum(psum[:, 1] / M - mean * mean, 0.0)
    inv_std = lax.rsqrt(var + BN_EPS)
    g = gamma.astype(jnp.float32)
    scale = (g * inv_std).reshape(OC, 1)
    shift = (beta.astype(jnp.float32) - mean * g * inv_std).reshape(OC, 1)

    # --- pass 2: recompute the tile conv (cheaper than an f32 y round-trip now that im2col is
    # in-kernel) + fused per-channel scale/shift + ReLU, written lane-dense in NC(HW) order ---
    out_full = pl.pallas_call(
        functools.partial(_apply_kernel, tap_offsets=tap_offsets, tm=tm),
        out_shape=jax.ShapeDtypeStruct((N, OC, T * tm), jnp.float32),
        grid=(N, T),
        in_specs=[w_spec,
                  pl.BlockSpec((OC, 1), lambda n, t: (0, 0)),
                  pl.BlockSpec((OC, 1), lambda n, t: (0, 0)),
                  cur_spec, halo_spec],
        out_specs=pl.BlockSpec((1, OC, tm), lambda n, t: (n, 0, t)),
        scratch_shapes=scratch,
        compiler_params=cparams,
    )(w_taps, scale, shift, xf, xf)

    # NCHW result is a reshape + crop (no transpose): keep the stride-decimated valid positions.
    y4 = out_full[:, :, :Lp].reshape(N, OC, Hp, Wp)
    return y4[:, :, ::stride, ::stride][:, :, :OH, :OW]


def reference_forward(x, weight, bias, gamma, beta, *, stride, operand_dtype=jnp.float32):
    """Pure-JAX reference mirroring PyTorch Conv2d + BatchNorm2d(train) + ReLU.
    operand_dtype=bfloat16 mirrors the kernel's MXU operand precision (f32 accumulation)."""
    pad = (weight.shape[2] - 1) // 2
    xw = x.astype(operand_dtype).astype(jnp.float32)
    ww = weight.astype(operand_dtype).astype(jnp.float32)
    y = lax.conv_general_dilated(
        xw, ww,
        window_strides=(stride, stride),
        padding=((pad, pad), (pad, pad)),
        dimension_numbers=("NCHW", "OIHW", "NCHW"),
    ) + bias.reshape(1, -1, 1, 1)
    mean = jnp.mean(y, axis=(0, 2, 3), keepdims=True)
    var = jnp.mean((y - mean) ** 2, axis=(0, 2, 3), keepdims=True)
    y = (y - mean) * lax.rsqrt(var + BN_EPS)
    y = y * gamma.reshape(1, -1, 1, 1) + beta.reshape(1, -1, 1, 1)
    return jnp.maximum(y, 0.0)


if __name__ == "__main__":
    # Small shapes consistent with the module's forward.
    N, C, H, W = 2, 4, 16, 16
    OC, K, stride = 8, 3, 1

    key = jax.random.PRNGKey(0)
    kx, kw, kb, kg, kbe = jax.random.split(key, 5)
    x = jax.random.normal(kx, (N, C, H, W), dtype=jnp.float32)
    weight = jax.random.normal(kw, (OC, C, K, K), dtype=jnp.float32) * 0.1
    bias = jax.random.normal(kb, (OC,), dtype=jnp.float32) * 0.1
    gamma = 1.0 + 0.1 * jax.random.normal(kg, (OC,), dtype=jnp.float32)
    beta = 0.1 * jax.random.normal(kbe, (OC,), dtype=jnp.float32)

    out = conv2d_norm_forward(x, weight, bias, gamma, beta, stride=stride)
    out = jax.block_until_ready(out)
    assert out.shape == (N, OC, H, W), out.shape

    # Tight check vs. a reference using the same (bf16-operand, f32-accumulate) conv precision.
    ref_bf16 = reference_forward(x, weight, bias, gamma, beta, stride=stride,
                                 operand_dtype=jnp.bfloat16)
    err_bf16 = float(jnp.max(jnp.abs(out - ref_bf16)))
    assert err_bf16 < 5e-3, err_bf16

    # Loose check vs. the pure-f32 PyTorch-equivalent reference (semantics preserved).
    ref_f32 = reference_forward(x, weight, bias, gamma, beta, stride=stride)
    err_f32 = float(jnp.max(jnp.abs(out - ref_f32)))
    assert err_f32 < 5e-2, err_f32

    print("KERNEL_OK")
</pallas_src>

<mosaic_0001>
module attributes {stable_mosaic.version = 11 : i64} {
  func.func @_stats_kernel(%arg0: i32, %arg1: i32, %arg2: memref<9x8x4xbf16, #tpu.memory_space<vmem>>, %arg3: memref<1x128xf32, #tpu.memory_space<vmem>>, %arg4: memref<1x4x128xbf16, #tpu.memory_space<vmem>>, %arg5: memref<1x4x128xbf16, #tpu.memory_space<vmem>>, %arg6: memref<1x1x8x2xf32, #tpu.memory_space<vmem>>, %arg7: memref<4x256xbf16, #tpu.memory_space<vmem>>) attributes {dimension_semantics = [#tpu.dimension_semantics<parallel>, #tpu.dimension_semantics<parallel>], iteration_bounds = array<i64: 2, 3>, scalar_prefetch = 0 : i64, scratch_operands = 1 : i64, tpu.core_type = #tpu.core_type<tc>, window_params = [{pipeline_mode = #tpu.pipeline_mode<synchronous>, transform_indices = @transform_0, window_bounds = array<i64: 9, 8, 4>}, {transform_indices = @transform_1, window_bounds = array<i64: 1, 128>}, {transform_indices = @transform_2, window_bounds = array<i64: 1, 4, 128>}, {transform_indices = @transform_3, window_bounds = array<i64: 1, 4, 128>}, {transform_indices = @transform_4, window_bounds = array<i64: 1, 1, 8, 2>}]} {
    %c0 = arith.constant 0 : index
    %c0_0 = arith.constant 0 : index
    %c0_1 = arith.constant 0 : index
    %0 = vector.load %arg4[%c0, %c0_0, %c0_1] : memref<1x4x128xbf16, #tpu.memory_space<vmem>>, vector<1x4x128xbf16>
    %1 = vector.shape_cast %0 : vector<1x4x128xbf16> to vector<4x128xbf16>
    %c0_2 = arith.constant 0 : index
    %c0_3 = arith.constant 0 : index
    %2 = vector.load %arg7[%c0_2, %c0_3] : memref<4x256xbf16, #tpu.memory_space<vmem>>, vector<4x128xbf16>
    tpu.vector_store %arg7[%c0_2, %c0_3], %1 {strides = array<i32>} : memref<4x256xbf16, #tpu.memory_space<vmem>>, vector<4x128xbf16>,
    %c0_4 = arith.constant 0 : index
    %c0_5 = arith.constant 0 : index
    %c0_6 = arith.constant 0 : index
    %3 = vector.load %arg5[%c0_4, %c0_5, %c0_6] : memref<1x4x128xbf16, #tpu.memory_space<vmem>>, vector<1x4x128xbf16>
    %4 = vector.shape_cast %3 : vector<1x4x128xbf16> to vector<4x128xbf16>
    %c0_7 = arith.constant 0 : index
    %c128 = arith.constant 128 : index
    %5 = vector.load %arg7[%c0_7, %c128] : memref<4x256xbf16, #tpu.memory_space<vmem>>, vector<4x128xbf16>
    tpu.vector_store %arg7[%c0_7, %c128], %4 {strides = array<i32>} : memref<4x256xbf16, #tpu.memory_space<vmem>>, vector<4x128xbf16>,
    %c0_8 = arith.constant 0 : index
    %c0_9 = arith.constant 0 : index
    %c0_10 = arith.constant 0 : index
    %6 = vector.load %arg2[%c0_8, %c0_9, %c0_10] : memref<9x8x4xbf16, #tpu.memory_space<vmem>>, vector<1x8x4xbf16>
    %7 = vector.shape_cast %6 : vector<1x8x4xbf16> to vector<8x4xbf16>
    %c0_11 = arith.constant 0 : index
    %c0_12 = arith.constant 0 : index
    %8 = vector.load %arg7[%c0_11, %c0_12] : memref<4x256xbf16, #tpu.memory_space<vmem>>, vector<4x128xbf16>
    %cst = arith.constant dense<0.000000e+00> : vector<8x128xf32>
    %9 = tpu.matmul %7, %8, %cst {dimension_numbers = #tpu.dot_dimension_numbers<[1], [0], [0], [1], [0, 0, 1, 1], [], []>} : vector<8x4xbf16>, vector<4x128xbf16>, vector<8x128xf32> -> vector<8x128xf32>
    %c1 = arith.constant 1 : index
    %c0_13 = arith.constant 0 : index
    %c0_14 = arith.constant 0 : index
    %10 = vector.load %arg2[%c1, %c0_13, %c0_14] : memref<9x8x4xbf16, #tpu.memory_space<vmem>>, vector<1x8x4xbf16>
    %11 = vector.shape_cast %10 : vector<1x8x4xbf16> to vector<8x4xbf16>
    %c0_15 = arith.constant 0 : index
    %c1_16 = arith.constant 1 : index
    %12 = vector.load %arg7[%c0_15, %c1_16] : memref<4x256xbf16, #tpu.memory_space<vmem>>, vector<4x128xbf16>
    %cst_17 = arith.constant dense<0.000000e+00> : vector<8x128xf32>
    %13 = tpu.matmul %11, %12, %cst_17 {dimension_numbers = #tpu.dot_dimension_numbers<[1], [0], [0], [1], [0, 0, 1, 1], [], []>} : vector<8x4xbf16>, vector<4x128xbf16>, vector<8x128xf32> -> vector<8x128xf32>
    %14 = arith.addf %9, %13 : vector<8x128xf32>
    %c2 = arith.constant 2 : index
    %c0_18 = arith.constant 0 : index
    %c0_19 = arith.constant 0 : index
    %15 = vector.load %arg2[%c2, %c0_18, %c0_19] : memref<9x8x4xbf16, #tpu.memory_space<vmem>>, vector<1x8x4xbf16>
    %16 = vector.shape_cast %15 : vector<1x8x4xbf16> to vector<8x4xbf16>
    %c0_20 = arith.constant 0 : index
    %c2_21 = arith.constant 2 : index
    %17 = vector.load %arg7[%c0_20, %c2_21] : memref<4x256xbf16, #tpu.memory_space<vmem>>, vector<4x128xbf16>
    %cst_22 = arith.constant dense<0.000000e+00> : vector<8x128xf32>
    %18 = tpu.matmul %16, %17, %cst_22 {dimension_numbers = #tpu.dot_dimension_numbers<[1], [0], [0], [1], [0, 0, 1, 1], [], []>} : vector<8x4xbf16>, vector<4x128xbf16>, vector<8x128xf32> -> vector<8x128xf32>
    %19 = arith.addf %14, %18 : vector<8x128xf32>
    %c3 = arith.constant 3 : index
    %c0_23 = arith.constant 0 : index
    %c0_24 = arith.constant 0 : index
    %20 = vector.load %arg2[%c3, %c0_23, %c0_24] : memref<9x8x4xbf16, #tpu.memory_space<vmem>>, vector<1x8x4xbf16>
    %21 = vector.shape_cast %20 : vector<1x8x4xbf16> to vector<8x4xbf16>
    %c0_25 = arith.constant 0 : index
    %c18 = arith.constant 18 : index
    %22 = vector.load %arg7[%c0_25, %c18] : memref<4x256xbf16, #tpu.memory_space<vmem>>, vector<4x128xbf16>
    %cst_26 = arith.constant dense<0.000000e+00> : vector<8x128xf32>
    %23 = tpu.matmul %21, %22, %cst_26 {dimension_numbers = #tpu.dot_dimension_numbers<[1], [0], [0], [1], [0, 0, 1, 1], [], []>} : vector<8x4xbf16>, vector<4x128xbf16>, vector<8x128xf32> -> vector<8x128xf32>
    %24 = arith.addf %19, %23 : vector<8x128xf32>
    %c4 = arith.constant 4 : index
    %c0_27 = arith.constant 0 : index
    %c0_28 = arith.constant 0 : index
    %25 = vector.load %arg2[%c4, %c0_27, %c0_28] : memref<9x8x4xbf16, #tpu.memory_space<vmem>>, vector<1x8x4xbf16>
    %26 = vector.shape_cast %25 : vector<1x8x4xbf16> to vector<8x4xbf16>
    %c0_29 = arith.constant 0 : index
    %c19 = arith.constant 19 : index
    %27 = vector.load %arg7[%c0_29, %c19] : memref<4x256xbf16, #tpu.memory_space<vmem>>, vector<4x128xbf16>
    %cst_30 = arith.constant dense<0.000000e+00> : vector<8x128xf32>
    %28 = tpu.matmul %26, %27, %cst_30 {dimension_numbers = #tpu.dot_dimension_numbers<[1], [0], [0], [1], [0, 0, 1, 1], [], []>} : vector<8x4xbf16>, vector<4x128xbf16>, vector<8x128xf32> -> vector<8x128xf32>
    %29 = arith.addf %24, %28 : vector<8x128xf32>
    %c5 = arith.constant 5 : index
    %c0_31 = arith.constant 0 : index
    %c0_32 = arith.constant 0 : index
    %30 = vector.load %arg2[%c5, %c0_31, %c0_32] : memref<9x8x4xbf16, #tpu.memory_space<vmem>>, vector<1x8x4xbf16>
    %31 = vector.shape_cast %30 : vector<1x8x4xbf16> to vector<8x4xbf16>
    %c0_33 = arith.constant 0 : index
    %c20 = arith.constant 20 : index
    %32 = vector.load %arg7[%c0_33, %c20] : memref<4x256xbf16, #tpu.memory_space<vmem>>, vector<4x128xbf16>
    %cst_34 = arith.constant dense<0.000000e+00> : vector<8x128xf32>
    %33 = tpu.matmul %31, %32, %cst_34 {dimension_numbers = #tpu.dot_dimension_numbers<[1], [0], [0], [1], [0, 0, 1, 1], [], []>} : vector<8x4xbf16>, vector<4x128xbf16>, vector<8x128xf32> -> vector<8x128xf32>
    %34 = arith.addf %29, %33 : vector<8x128xf32>
    %c6 = arith.constant 6 : index
    %c0_35 = arith.constant 0 : index
    %c0_36 = arith.constant 0 : index
    %35 = vector.load %arg2[%c6, %c0_35, %c0_36] : memref<9x8x4xbf16, #tpu.memory_space<vmem>>, vector<1x8x4xbf16>
    %36 = vector.shape_cast %35 : vector<1x8x4xbf16> to vector<8x4xbf16>
    %c0_37 = arith.constant 0 : index
    %c36 = arith.constant 36 : index
    %37 = vector.load %arg7[%c0_37, %c36] : memref<4x256xbf16, #tpu.memory_space<vmem>>, vector<4x128xbf16>
    %cst_38 = arith.constant dense<0.000000e+00> : vector<8x128xf32>
    %38 = tpu.matmul %36, %37, %cst_38 {dimension_numbers = #tpu.dot_dimension_numbers<[1], [0], [0], [1], [0, 0, 1, 1], [], []>} : vector<8x4xbf16>, vector<4x128xbf16>, vector<8x128xf32> -> vector<8x128xf32>
    %39 = arith.addf %34, %38 : vector<8x128xf32>
    %c7 = arith.constant 7 : index
    %c0_39 = arith.constant 0 : index
    %c0_40 = arith.constant 0 : index
    %40 = vector.load %arg2[%c7, %c0_39, %c0_40] : memref<9x8x4xbf16, #tpu.memory_space<vmem>>, vector<1x8x4xbf16>
    %41 = vector.shape_cast %40 : vector<1x8x4xbf16> to vector<8x4xbf16>
    %c0_41 = arith.constant 0 : index
    %c37 = arith.constant 37 : index
    %42 = vector.load %arg7[%c0_41, %c37] : memref<4x256xbf16, #tpu.memory_space<vmem>>, vector<4x128xbf16>
    %cst_42 = arith.constant dense<0.000000e+00> : vector<8x128xf32>
    %43 = tpu.matmul %41, %42, %cst_42 {dimension_numbers = #tpu.dot_dimension_numbers<[1], [0], [0], [1], [0, 0, 1, 1], [], []>} : vector<8x4xbf16>, vector<4x128xbf16>, vector<8x128xf32> -> vector<8x128xf32>
    %44 = arith.addf %39, %43 : vector<8x128xf32>
    %c8 = arith.constant 8 : index
    %c0_43 = arith.constant 0 : index
    %c0_44 = arith.constant 0 : index
    %45 = vector.load %arg2[%c8, %c0_43, %c0_44] : memref<9x8x4xbf16, #tpu.memory_space<vmem>>, vector<1x8x4xbf16>
    %46 = vector.shape_cast %45 : vector<1x8x4xbf16> to vector<8x4xbf16>
    %c0_45 = arith.constant 0 : index
    %c38 = arith.constant 38 : index
    %47 = vector.load %arg7[%c0_45, %c38] : memref<4x256xbf16, #tpu.memory_space<vmem>>, vector<4x128xbf16>
    %cst_46 = arith.constant dense<0.000000e+00> : vector<8x128xf32>
    %48 = tpu.matmul %46, %47, %cst_46 {dimension_numbers = #tpu.dot_dimension_numbers<[1], [0], [0], [1], [0, 0, 1, 1], [], []>} : vector<8x4xbf16>, vector<4x128xbf16>, vector<8x128xf32> -> vector<8x128xf32>
    %49 = arith.addf %44, %48 : vector<8x128xf32>
    %c0_47 = arith.constant 0 : index
    %c0_48 = arith.constant 0 : index
    %50 = vector.load %arg3[%c0_47, %c0_48] : memref<1x128xf32, #tpu.memory_space<vmem>>, vector<1x128xf32>
    %51 = vector.broadcast %50 : vector<1x128xf32> to vector<8x128xf32>
    %52 = arith.mulf %49, %51 : vector<8x128xf32>
    %cst_49 = arith.constant dense<0.000000e+00> : vector<8xf32>
    %53 = vector.multi_reduction <add>, %52, %cst_49 [1] : vector<8x128xf32> to vector<8xf32>
    %54 = vector.shape_cast %53 : vector<8xf32> to vector<8x1xf32>
    %55 = arith.mulf %52, %49 : vector<8x128xf32>
    %cst_50 = arith.constant dense<0.000000e+00> : vector<8xf32>
    %56 = vector.multi_reduction <add>, %55, %cst_50 [1] : vector<8x128xf32> to vector<8xf32>
    %57 = vector.shape_cast %56 : vector<8xf32> to vector<8x1xf32>
    %58 = tpu.concatenate %54, %57 in 1 : vector<8x1xf32>, vector<8x1xf32> -> vector<8x2xf32>
    %c0_51 = arith.constant 0 : index
    %c0_52 = arith.constant 0 : index
    %c0_53 = arith.constant 0 : index
    %c0_54 = arith.constant 0 : index
    %59 = vector.load %arg6[%c0_51, %c0_52, %c0_53, %c0_54] : memref<1x1x8x2xf32, #tpu.memory_space<vmem>>, vector<1x1x8x2xf32>
    %60 = vector.shape_cast %59 : vector<1x1x8x2xf32> to vector<8x2xf32>
    %61 = vector.shape_cast %58 : vector<8x2xf32> to vector<1x1x8x2xf32>
    tpu.vector_store %arg6[%c0_51, %c0_52, %c0_53, %c0_54], %61 {strides = array<i32>} : memref<1x1x8x2xf32, #tpu.memory_space<vmem>>, vector<1x1x8x2xf32>,
    return
  }
  func.func @transform_0(%arg0: i32, %arg1: i32) -> (i32, i32, i32) {
    %c0_i32 = arith.constant 0 : i32
    %c0_i32_0 = arith.constant 0 : i32
    %c0_i32_1 = arith.constant 0 : i32
    %c0_i32_2 = arith.constant 0 : i32
    return %c0_i32, %c0_i32_0, %c0_i32_1 : i32, i32, i32
  }
  func.func @transform_1(%arg0: i32, %arg1: i32) -> (i32, i32) {
    %c0_i32 = arith.constant 0 : i32
    %c0_i32_0 = arith.constant 0 : i32
    return %c0_i32, %arg1 : i32, i32
  }
  func.func @transform_2(%arg0: i32, %arg1: i32) -> (i32, i32, i32) {
    %c0_i32 = arith.constant 0 : i32
    %c0_i32_0 = arith.constant 0 : i32
    return %arg0, %c0_i32, %arg1 : i32, i32, i32
  }
  func.func @transform_3(%arg0: i32, %arg1: i32) -> (i32, i32, i32) {
    %c1_i32 = arith.constant 1 : i32
    %0 = arith.addi %arg1, %c1_i32 : i32
    %c1_i32_0 = arith.constant 1 : i32
    %1 = arith.muli %0, %c1_i32_0 : i32
    %c0_i32 = arith.constant 0 : i32
    %c0_i32_1 = arith.constant 0 : i32
    return %arg0, %c0_i32, %1 : i32, i32, i32
  }
  func.func @transform_4(%arg0: i32, %arg1: i32) -> (i32, i32, i32, i32) {
    %c0_i32 = arith.constant 0 : i32
    %c0_i32_0 = arith.constant 0 : i32
    %c0_i32_1 = arith.constant 0 : i32
    return %arg0, %arg1, %c0_i32, %c0_i32_0 : i32, i32, i32, i32
  }
}

</mosaic_0001>

<bundles_post_ra>
// kernel: tpu_custom_call.1
= control target key start
LH: loop header
LB: loop body
LE: loop exit
PB: predicated region body
PF: predicated region fallthrough
CT: control target
= control target key end

     0   :  { %s1221_s15 = smov 0   ;;  %s1223_s16 = smov 0   ;;  %s1361_s0 = inlined_call_operand.vmem [shape: bf16[9,8,4], index: 0, kind: input, shape index: {}]   ;;  %s1362_s1 = inlined_call_operand.vmem [shape: f32[1,384], index: 1, kind: input, shape index: {}]   ;;  %s1363_s2 = inlined_call_operand.vmem [shape: bf16[2,4,512], index: 2, kind: input, shape index: {}]   ;;  %s1364_s3 = inlined_call_operand.vmem [shape: bf16[2,4,512], index: 3, kind: input, shape index: {}]   ;;  %s1365_s4 = inlined_call_operand.vmem [shape: f32[2,3,8,2], index: 4, kind: output, shape index: {}]  }
   0x1   :  { %s1225_s17 = smov 0   ;;  %s1227_s18 = smov 0  }
   0x2   :  { %s1229_s19 = smov 0  }
   0x3 LB: > { %s23_s20 = sadd.s32 1, %s1176_s17  ;;  %s26_s21 = sadd.s32 1, %s1180_s18  ;;  %s1184_s19 = sphi %s1229_s19, %s14_s19   ;;  %s1180_s18 = sphi %s1227_s18, %s1369_s18   ;;  %s1176_s17 = sphi %s1225_s17, %s1368_s17   ;;  %s1172_s16 = sphi %s1223_s16, %s1367_s16   ;;  %s1168_s15 = sphi %s1221_s15, %s1366_s15  }
   0x4   : > { %p24_p0 = scmp.ge.s32.totalorder %s23_s20, 3  ;;  %p989_p1 = scmp.ge.s32.totalorder %s1184_s19, 1 }
   0x5   : > { %p208_p2 = scmp.lt.s32.totalorder %s1184_s19, 7 }
   0x6   : > { %s1371_s20 = smov (%p24_p0, %s23_s20), 0  ;;  %s1373_s21 = smov (!%p24_p0, %s26_s21), %s1180_s18 }
   0x7   : > { %p209_p3 = pnand %p989_p1, %p208_p2  ;;  %p28_p4 = scmp.ge.s32.totalorder %s1373_s21, 2 }
   0x8   : > { %p255_p5 = scmp.lt.s32.totalorder (!%p209_p3), %s1172_s16, 1  ;;  %p257_p6 = scmp.lt.s32.totalorder (!%p209_p3), %s1168_s15, 3 }
   0x9   : > { %s1375_s21 = smov (%p28_p4, %s1373_s21), 0  ;;  %212 = sbr.rel (%p209_p3) target bundleno = 526 (0x20e), region = 36 }
   0xa   : > { %s263_s22 = sadd.s32 (!%p209_p3), 1, %s1168_s15  ;;  %s1188_s11 = smov (!%p209_p3), 126  }
   0xb   : > { %p266_p7 = scmp.lt.s32.totalorder (!%p209_p3), %s263_s22, 3  ;;  %s1189_s12 = smov (!%p209_p3), 127  }
   0xc   : > { %s1190_s13 = smov (!%p209_p3), 110   ;;  %s1191_s14 = smov (!%p209_p3), 109  }
   0xd   : > { %p252_p8 = scmp.lt.s32.totalorder (!%p209_p3), %s1168_s15, 2 }
   0xe   : > { %s1377_s16 = smov (!%p255_p5, %s1172_s16), 1  ;;  %s1379_s22 = smov (!%p266_p7, %s263_s22), 3  ;;  %vm310_vm0 = vcmask 1041408   ;;  %v1186_v2 = vmov 0.0   ;;  %vm1187_vm1 = vmmov 0   ;;  %vm306_vm2 = vcmask 31744  }
   0xf   : > { %s258_s23 = scalar_select %p257_p6, %s1168_s15, 3  ;;  %1041 = vmatprep.subr.bf16.mxu0 %v1186_v2  ;;  %1047 = vmatprep.subr.bf16.mxu1 %v1186_v2  ;;  %v286_v5 = vld [vmem:[%s1361_s0] sm:$0xf]  ;;  %vm416_vm3 = vcmask 1031168   ;;  %vm304_vm4 = vcmask 1039360   ;;  %vm481_vm5 = vcmask 900096  }
  0x10   : > { %s990_s24 = sshll.u32 %s1377_s16, 2  ;;  %1043 = vmatprep.mubr.msk.bf16.mxu0 %vm1187_vm1, %v1186_v2  ;;  %1049 = vmatprep.mubr.msk.bf16.mxu1 %vm1187_vm1, %v1186_v2  ;;  %v995_v15 = vld [vmem:[%s1361_s0 + $0x4] sm:$0xf]  ;;  %vm546_vm6 = vcmask 891904   ;;  %v1002_v21 = vld [vmem:[%s1361_s0 + $0xc] sm:$0xf] }
  0x11   : > { %s260_s25 = sadd.s32 %s990_s24, %s258_s23  ;;  %s269_s30 = sadd.s32 %s990_s24, %s1379_s22  ;;  %vm611_vm7 = vcmask 883712   ;;  %v999_v25 = vld [vmem:[%s1361_s0 + $0x8] sm:$0xf]  ;;  %vm676_vm8 = vcmask 752640   ;;  %v1008_v31 = vld [vmem:[%s1361_s0 + $0x14] sm:$0xf] }
  0x12   : > { %s991_s26 = sshll.u32 %s260_s25, 1  ;;  %s993_s5 = sshll.u32 %s269_s30, 1  ;;  %vm741_vm9 = vcmask 744448   ;;  %v1005_v35 = vld [vmem:[%s1361_s0 + $0x10] sm:$0xf]  ;;  %vm806_vm10 = vcmask 736256  }
  0x13   : > { %s262_s29 = scalar_lea.vmem %s1363_s2, %s991_s26  ;;  %s271_s8 = scalar_lea.vmem %s1364_s3, %s993_s5  ;;  %v1014_v41 = vld [vmem:[%s1361_s0 + $0x1c] sm:$0xf]  ;;  %v1011_v45 = vld [vmem:[%s1361_s0 + $0x18] sm:$0xf]  ;;  %v1017_v47 = vld [vmem:[%s1361_s0 + $0x20] sm:$0xf] }
  0x14   : > { %v282_v0 = vld [vmem:[%s262_s29] sm:$0x3]  ;;  %s1192_s22 = smov 108   ;;  %s1193_s23 = smov 92   ;;  %vm868_vm11 = vcmask 7168   ;;  %vm870_vm12 = vcmask 15360  }
  0x15   : > { %283 = vst [vmem:[#allocation2] sm:$0x3] %v282_v0  ;;  %v284_v1 = vld [vmem:[%s271_s8] sm:$0x3]  ;;  %s1194_s24 = smov 91   ;;  %s1195_s25 = smov 90  }
  0x16   : > { %285 = vst [vmem:[#allocation2 + $0x2] sm:$0x3] %v284_v1  ;;  %s1381_s15 = smov (!%p252_p8, %s1168_s15), 2  ;;  %s1095_s26 = smul.u32 3, %s1377_s16 }
  0x18   : > { %s278_s27 = sadd.s32 %s1095_s26, %s1381_s15 }
  0x19   : > { %s994_s28 = sshll.u32 %s278_s27, 3 }
  0x1a   : > { %s280_s5 = scalar_lea.vmem %s1365_s4, %s994_s28 }
  0x1c   : > { %v287_v3 = vld [vmem:[#allocation2] sm:$0x3] }
  0x1d   : > { %v358_v4 = vsel %vm310_vm0, %v287_v3, 0  ;;  %v1000_v6 = vld.sshfl [vmem:[#allocation2] sm:$0x33 pattern:$0x76325410] }
  0x1e   : > { %1048 = vmatpush3.bf16.msra.mxu1 %v358_v4  ;;  %412 = vrot.lane.b32.xlu1 %v1000_v6, %s1188_s11  ;;  %v411_v7 = vcombine.high %v1000_v6, %v1000_v6 }
  0x1f   : > { %1059 = vmatprep.subr.bf16.mxu1 %v1186_v2  ;;  %300 = vrot.lane.b32.xlu0 %v1000_v6, %s1189_s12 }
  0x21   : > { %1050 = vmatmul.mubr.msk.bf16.vlgmr.msra.gmra.mxu1 %vm306_vm2, %v286_v5 }
  0x22   : > { %1061 = vmatprep.mubr.msk.bf16.mxu1 %vm1187_vm1, %v1186_v2  ;;  %414 = vrot.lane.b32.xlu1 %v411_v7, %s1188_s11 }
  0x23   : > { %302 = vrot.lane.b32.xlu0 %v411_v7, %s1189_s12 }
  0x26   : > { %479 = vrot.lane.b32.xlu1 %v411_v7, %s1190_s13 }
  0x27   : > { %477 = vrot.lane.b32.xlu0 %v1000_v6, %s1190_s13 }
  0x2a   : > { %544 = vrot.lane.b32.xlu1 %v411_v7, %s1191_s14 }
  0x2b   : > { %542 = vrot.lane.b32.xlu0 %v1000_v6, %s1191_s14 }
  0x2e   : > { %609 = vrot.lane.b32.xlu1 %v411_v7, %s1192_s22 }
  0x2f   : > { %607 = vrot.lane.b32.xlu0 %v1000_v6, %s1192_s22 }
  0x32   : > { %674 = vrot.lane.b32.xlu1 %v411_v7, %s1193_s23 }
  0x33   : > { %672 = vrot.lane.b32.xlu0 %v1000_v6, %s1193_s23 }
  0x36   : > { %739 = vrot.lane.b32.xlu1 %v411_v7, %s1194_s24 }
  0x37   : > { %737 = vrot.lane.b32.xlu0 %v1000_v6, %s1194_s24 }
  0x3a   : > { %804 = vrot.lane.b32.xlu1 %v411_v7, %s1195_s25 }
  0x3b   : > { %802 = vrot.lane.b32.xlu0 %v1000_v6, %s1195_s25  ;;  %s254_s25 = scalar_lea.vmem %s1362_s1, %s1381_s15 }
  0x90   : > { %v413_v8 = vpop.permute.xlu1 %412 }
  0x91   : > { %v301_v9 = vpop.permute.xlu0 %300 }
  0x94   : > { %v415_v10 = vpop.permute.xlu1 %414 }
  0x95   : > { %v303_v11 = vpop.permute.xlu0 %302  ;;  %v417_v12 = vsel %vm416_vm3, %v413_v8, %v415_v10 }
  0x96   : > { %v305_v13 = vsel %vm304_vm4, %v301_v9, %v303_v11  ;;  %v422_v16 = vsel %vm310_vm0, %v417_v12, 0 }
  0x97   : > { %v312_v14 = vsel %vm310_vm0, %v305_v13, 0 }
  0x98   : > { %1042 = vmatpush3.bf16.msra.mxu0 %v312_v14  ;;  %v480_v17 = vpop.permute.xlu1 %479 }
  0x99   : > { %1053 = vmatprep.subr.bf16.mxu0 %v1186_v2  ;;  %v478_v18 = vpop.permute.xlu0 %477 }
  0x9a   : > { %v482_v19 = vsel %vm481_vm5, %v478_v18, %v480_v17 }
  0x9b   : > { %1044 = vmatmul.mubr.msk.bf16.vlgmr.msra.gmra.mxu0 %vm306_vm2, %v995_v15  ;;  %v487_v20 = vsel %vm310_vm0, %v482_v19, 0 }
  0x9c   : > { %1054 = vmatpush3.bf16.msra.mxu0 %v422_v16  ;;  %1060 = vmatpush3.bf16.msra.mxu1 %v487_v20  ;;  %v545_v22 = vpop.permute.xlu1 %544 }
  0x9d   : > { %v543_v23 = vpop.permute.xlu0 %542  ;;  %1055 = vmatprep.mubr.msk.bf16.mxu0 %vm1187_vm1, %v1186_v2  ;;  %1065 = vmatprep.subr.bf16.mxu0 %v1186_v2 }
  0x9e   : > { %v547_v24 = vsel %vm546_vm6, %v543_v23, %v545_v22  ;;  %1071 = vmatprep.subr.bf16.mxu1 %v1186_v2 }
  0x9f   : > { %1062 = vmatmul.mubr.msk.bf16.vlgmr.msra.gmra.mxu1 %vm306_vm2, %v1002_v21  ;;  %v552_v26 = vsel %vm310_vm0, %v547_v24, 0  ;;  %v1020_v24 = vld [vmem:[%s254_s25] ss:$0 sm:$0xff] }
  0xa0   : > { %1073 = vmatprep.mubr.msk.bf16.mxu1 %vm1187_vm1, %v1186_v2  ;;  %v610_v27 = vpop.permute.xlu1 %609 }
  0xa1   : > { %v608_v28 = vpop.permute.xlu0 %607 }
  0xa2   : > { %v612_v29 = vsel %vm611_vm7, %v608_v28, %v610_v27 }
  0xa3   : > { %1056 = vmatmul.mubr.msk.bf16.vlgmr.msra.gmra.mxu0 %vm306_vm2, %v999_v25  ;;  %v617_v30 = vsel %vm310_vm0, %v612_v29, 0 }
  0xa4   : > { %1066 = vmatpush3.bf16.msra.mxu0 %v552_v26  ;;  %1072 = vmatpush3.bf16.msra.mxu1 %v617_v30  ;;  %v675_v32 = vpop.permute.xlu1 %674 }
  0xa5   : > { %v673_v33 = vpop.permute.xlu0 %672  ;;  %1067 = vmatprep.mubr.msk.bf16.mxu0 %vm1187_vm1, %v1186_v2  ;;  %1077 = vmatprep.subr.bf16.mxu0 %v1186_v2 }
  0xa6   : > { %v677_v34 = vsel %vm676_vm8, %v673_v33, %v675_v32  ;;  %1083 = vmatprep.subr.bf16.mxu1 %v1186_v2 }
  0xa7   : > { %1074 = vmatmul.mubr.msk.bf16.vlgmr.msra.gmra.mxu1 %vm306_vm2, %v1008_v31  ;;  %v682_v36 = vsel %vm310_vm0, %v677_v34, 0 }
  0xa8   : > { %1085 = vmatprep.mubr.msk.bf16.mxu1 %vm1187_vm1, %v1186_v2  ;;  %v740_v37 = vpop.permute.xlu1 %739 }
  0xa9   : > { %v738_v38 = vpop.permute.xlu0 %737 }
  0xaa   : > { %v742_v39 = vsel %vm741_vm9, %v738_v38, %v740_v37 }
  0xab   : > { %1068 = vmatmul.mubr.msk.bf16.vlgmr.msra.gmra.mxu0 %vm306_vm2, %v1005_v35  ;;  %v747_v40 = vsel %vm310_vm0, %v742_v39, 0 }
  0xac   : > { %1078 = vmatpush3.bf16.msra.mxu0 %v682_v36  ;;  %1084 = vmatpush3.bf16.msra.mxu1 %v747_v40  ;;  %v805_v42 = vpop.permute.xlu1 %804 }
  0xad   : > { %v803_v43 = vpop.permute.xlu0 %802  ;;  %1079 = vmatprep.mubr.msk.bf16.mxu0 %vm1187_vm1, %v1186_v2  ;;  %1089 = vmatprep.subr.bf16.mxu0 %v1186_v2 }
  0xae   : > { %v807_v44 = vsel %vm806_vm10, %v803_v43, %v805_v42 }
  0xaf   : > { %1086 = vmatmul.mubr.msk.bf16.vlgmr.msra.gmra.mxu1 %vm306_vm2, %v1014_v41  ;;  %v812_v46 = vsel %vm310_vm0, %v807_v44, 0 }
  0xb3   : > { %1080 = vmatmul.mubr.msk.bf16.vlgmr.msra.gmra.mxu0 %vm306_vm2, %v1011_v45 }
  0xb4   : > { %1090 = vmatpush3.bf16.msra.mxu0 %v812_v46  ;;  %1091 = vmatprep.mubr.msk.bf16.mxu0 %vm1187_vm1, %v1186_v2 }
  0xbb   : > { %1092 = vmatmul.mubr.msk.bf16.vlgmr.msra.gmra.mxu0 %vm306_vm2, %v1017_v47 }
  0xe1   : > { %v394_v48 = vpop.f32.mrf.mxu1 }
  0xe3   : > { %v1051_v49 = vpop.f32.mrf.mxu1 }
  0xe5   : > { %v397_v50 = vpop.f32.mrf.mxu1 }
  0xe7   : > { %v1052_v51 = vpop.f32.mrf.mxu1 }
 0x15b   : > { %v348_v52 = vpop.f32.mrf.mxu0 }
 0x15c   : > { %v395_v0 = vadd.f32 %v394_v48, %v348_v52 }
 0x15d   : > { %v1045_v53 = vpop.f32.mrf.mxu0 }
 0x15f   : > { %v351_v54 = vpop.f32.mrf.mxu0  ;;  %v523_v55 = vpop.f32.mrf.mxu1 }
 0x161   : > { %v1046_v56 = vpop.f32.mrf.mxu0  ;;  %v1063_v57 = vpop.f32.mrf.mxu1 }
 0x163   : > { %v458_v58 = vpop.f32.mrf.mxu0  ;;  %v526_v59 = vpop.f32.mrf.mxu1 }
 0x164   : > { %v464_v3 = vadd.f32 %v458_v58, %v395_v0 }
 0x165   : > { %v1057_v60 = vpop.f32.mrf.mxu0  ;;  %v1064_v61 = vpop.f32.mrf.mxu1 }
 0x166   : > { %v529_v8 = vadd.f32 %v523_v55, %v464_v3 }
 0x167   : > { %v461_v62 = vpop.f32.mrf.mxu0  ;;  %v653_v63 = vpop.f32.mrf.mxu1 }
 0x169   : > { %v1058_v1 = vpop.f32.mrf.mxu0  ;;  %v1075_v2 = vpop.f32.mrf.mxu1 }
 0x16b   : > { %v588_v4 = vpop.f32.mrf.mxu0  ;;  %v656_v5 = vpop.f32.mrf.mxu1 }
 0x16c   : > { %v594_v11 = vadd.f32 %v588_v4, %v529_v8 }
 0x16d   : > { %v1069_v6 = vpop.f32.mrf.mxu0  ;;  %v1076_v7 = vpop.f32.mrf.mxu1 }
 0x16e   : > { %v659_v16 = vadd.f32 %v653_v63, %v594_v11 }
 0x16f   : > { %v591_v9 = vpop.f32.mrf.mxu0  ;;  %v783_v10 = vpop.f32.mrf.mxu1 }
 0x171   : > { %v1070_v12 = vpop.f32.mrf.mxu0  ;;  %v1087_v13 = vpop.f32.mrf.mxu1 }
 0x173   : > { %v718_v14 = vpop.f32.mrf.mxu0  ;;  %v786_v15 = vpop.f32.mrf.mxu1 }
 0x174   : > { %v724_v19 = vadd.f32 %v718_v14, %v659_v16 }
 0x175   : > { %v1081_v17 = vpop.f32.mrf.mxu0  ;;  %v1088_v18 = vpop.f32.mrf.mxu1 }
 0x176   : > { %v789_v22 = vadd.f32 %v783_v10, %v724_v19 }
 0x177   : > { %v721_v20 = vpop.f32.mrf.mxu0 }
 0x179   : > { %v1082_v21 = vpop.f32.mrf.mxu0 }
 0x17b   : > { %v848_v23 = vpop.f32.mrf.mxu0 }
 0x17c   : > { %v854_v25 = vadd.f32 %v848_v23, %v789_v22 }
 0x17d   : > { %v1093_v26 = vpop.f32.mrf.mxu0 }
 0x17e   : > { %v862_v27 = vmul.f32 %v1020_v24, %v854_v25 }
 0x17f   : > { %v851_v28 = vpop.f32.mrf.mxu0 }
 0x180   : > { %863 = vadd.xlane.f32.xlu0 %v862_v27  ;;  %v865_v29 = vmul.f32 %v862_v27, %v854_v25 }
 0x181   : > { %v1094_v30 = vpop.f32.mrf.mxu0 }
 0x182   : > { %866 = vadd.xlane.f32.xlu1 %v865_v29 }
 0x209   : > { %v864_v31 = vpop.xlane.xlu0 %863 }
 0x20b   : > { %v867_v32 = vpop.xlane.xlu1 %866 }
 0x20c   : > { %v869_v33 = vsel %vm868_vm11, %v864_v31, %v867_v32 }
 0x20d   : > { %871 = vst.msk [vmem:[%s280_s5] sm:$0xff] %vm870_vm12, %v869_v33 }
 0x20e PF: > { %s14_s19 = sadd.s32 1, %s1184_s19   ;;  %s1366_s15 = smov %s1176_s17 }
 0x20f   : > { %p11_p9 = scmp.ge.s32.totalorder %s14_s19, 8   ;;  %s1367_s16 = smov %s1180_s18 }
 0x210   : > { %s1368_s17 = smov %s1371_s20  ;;  %s1369_s18 = smov %s1375_s21 }
 0x211   :  { %13 = sbr.rel (!%p11_p9) target bundleno = 3 (0x3), region = 80 }

</bundles_post_ra>
